<compile_context>
chip_gen: v7x
topology: tpu7x:2x2x1
jax: 0.10.0
libtpu: 0.0.40
codegen_flags: <defaults>
</compile_context>

<pallas_src>
import functools

import numpy as np
import jax
import jax.numpy as jnp
from jax import lax
from jax.experimental import pallas as pl
from jax.experimental.pallas import tpu as pltpu

NEG = -1e30  # "minus infinity" that stays finite in f32 arithmetic


def _round_up(x, m):
    return ((x + m - 1) // m) * m


# --------------------------------------------------------------------------------------
# Kernel 1: fused linear + log_softmax(vocab) + emission gather (lp @ onehot(ext))
# --------------------------------------------------------------------------------------
def linear_logsoftmax_emit_kernel(x_ref, w_ref, b_ref, ext_ref, lp_ref, em_ref):
    # x_ref: (t_tile, D)    w_ref: (D, V)    b_ref: (1, V)    ext_ref: (1, Sp) int32
    # lp_ref: (t_tile, V)   em_ref: (t_tile, Sp)
    logits = jnp.dot(x_ref[...], w_ref[...], preferred_element_type=jnp.float32)
    logits = logits + b_ref[...].astype(jnp.float32)
    m = jnp.max(logits, axis=-1, keepdims=True)
    lse = m + jnp.log(jnp.sum(jnp.exp(logits - m), axis=-1, keepdims=True))
    lp = logits - lse
    lp_ref[...] = lp.astype(lp_ref.dtype)

    V = logits.shape[1]
    Sp = ext_ref.shape[1]
    # one-hot of the extended (blank-interleaved) label sequence, built in-kernel
    onehot = (lax.broadcasted_iota(jnp.int32, (V, Sp), 0) == ext_ref[...]).astype(jnp.float32)
    em_ref[...] = jnp.dot(lp, onehot, preferred_element_type=jnp.float32)


def ctc_log_probs_and_emissions(hs_pad, weight, bias, ext, *, matmul_dtype=jnp.float32):
    """Returns (log_probs (B, T, V) f32, emissions (B, T_pad, Sp) f32)."""
    B, T, D = hs_pad.shape
    V = weight.shape[1]
    Sp = ext.shape[-1]

    # large time tiles: up to 256 rows per MXU matmul, lane/sublane-dense stores
    t_tile = 256 if T >= 256 else _round_up(T, 8)
    T_pad = _round_up(T, t_tile)

    x = hs_pad.astype(matmul_dtype)
    if T_pad != T:
        x = jnp.pad(x, ((0, 0), (0, T_pad - T), (0, 0)))
    w = weight.astype(matmul_dtype)
    b = bias.reshape(1, V).astype(jnp.float32)
    ext3 = ext.reshape(B, 1, Sp).astype(jnp.int32)

    # explicit VMEM budget: resident weight + double-buffered x / lp / em tiles
    itemsize = jnp.dtype(matmul_dtype).itemsize
    est = (D * V * itemsize + V * 4) + 2 * t_tile * (D * itemsize + (V + Sp) * 4) + 2 * Sp * 4
    vmem_limit = int(min(max(2 * est, 32 * 2 ** 20), 100 * 2 ** 20))

    lp, em = pl.pallas_call(
        linear_logsoftmax_emit_kernel,
        out_shape=(jax.ShapeDtypeStruct((B, T_pad, V), jnp.float32),
                   jax.ShapeDtypeStruct((B, T_pad, Sp), jnp.float32)),
        grid=(B, T_pad // t_tile),
        in_specs=[
            pl.BlockSpec((None, t_tile, D), lambda b_, t_: (b_, t_, 0)),
            pl.BlockSpec((D, V), lambda b_, t_: (0, 0)),       # resident weight
            pl.BlockSpec((1, V), lambda b_, t_: (0, 0)),
            pl.BlockSpec((None, 1, Sp), lambda b_, t_: (b_, 0, 0)),
        ],
        out_specs=[
            pl.BlockSpec((None, t_tile, V), lambda b_, t_: (b_, t_, 0)),
            pl.BlockSpec((None, t_tile, Sp), lambda b_, t_: (b_, t_, 0)),
        ],
        compiler_params=pltpu.CompilerParams(
            dimension_semantics=("parallel", "parallel"),
            vmem_limit_bytes=vmem_limit),
    )(x, w, b, ext3)
    return lp[:, :T, :], em


# --------------------------------------------------------------------------------------
# Kernel 2: CTC forward algorithm, 8 utterances per grid step, roll-based shifts
# --------------------------------------------------------------------------------------
def ctc_dp_kernel(em_ref, vmask_ref, smask_ref, fmask_ref, hlen_ref, nll_ref, *, t_end):
    # em_ref:   (T_pad, G, Sp) f32   time-major emission log-probs for this group
    # vmask_ref/smask_ref/fmask_ref: (G, Sp) f32 additive masks (0 or NEG)
    # hlen_ref: (G, Sp) int32        per-row input length broadcast along lanes
    # nll_ref:  (G, 128) f32         per-utterance negative log-likelihood (broadcast)
    G, Sp = vmask_ref.shape
    iota = lax.broadcasted_iota(jnp.int32, (G, Sp), 1)
    vmask = vmask_ref[...]
    smask = smask_ref[...]
    hlen = hlen_ref[...]
    mask1 = jnp.where(iota >= 1, 0.0, NEG).astype(jnp.float32)      # s-1 transition valid
    init_mask = jnp.where(iota < 2, 0.0, NEG).astype(jnp.float32)   # t=0: only s in {0,1}

    alpha0 = jnp.maximum(em_ref[0] + vmask + init_mask, NEG)

    def body(t, alpha):
        a1 = pltpu.roll(alpha, shift=1, axis=1) + mask1             # alpha[s-1]
        a2 = pltpu.roll(alpha, shift=2, axis=1) + smask             # alpha[s-2] (skip)
        m = jnp.maximum(jnp.maximum(alpha, a1), a2)
        lse = m + jnp.log(jnp.exp(alpha - m) + jnp.exp(a1 - m) + jnp.exp(a2 - m))
        new_alpha = jnp.maximum(lse + em_ref[t] + vmask, NEG)
        # only advance rows while t < hlens[b]
        return jnp.where(t < hlen, new_alpha, alpha)

    alpha = lax.fori_loop(1, t_end, body, alpha0)

    # logsumexp over the two final states (s = 2*S_b, 2*S_b - 1), encoded in fmask
    vals = alpha + fmask_ref[...]
    m = jnp.max(vals, axis=1, keepdims=True)
    ll = m + jnp.log(jnp.sum(jnp.exp(vals - m), axis=1, keepdims=True))   # (G, 1)
    nll_ref[...] = jnp.broadcast_to(-ll, (G, 128))


def build_ctc_masks(ys_pad, ys_lens, hlens, *, B_pad, Sp, blank_id):
    """All-JAX (jit-friendly) construction of ext labels and additive masks."""
    B, L = ys_pad.shape
    ys = jnp.pad(ys_pad.astype(jnp.int32), ((0, B_pad - B), (0, 0)))
    yl = jnp.pad(ys_lens.astype(jnp.int32), (0, B_pad - B))
    hl = jnp.pad(hlens.astype(jnp.int32), (0, B_pad - B))
    s = jnp.arange(Sp, dtype=jnp.int32)[None, :]                     # (1, Sp)

    if L > 0:
        lab = jnp.clip((s - 1) // 2, 0, L - 1)
        gathered = jnp.take_along_axis(ys, jnp.broadcast_to(lab, (B_pad, Sp)), axis=1)
        is_lab = (s % 2 == 1) & (((s - 1) // 2) < L)
        ext = jnp.where(is_lab, gathered, blank_id).astype(jnp.int32)
    else:
        ext = jnp.full((B_pad, Sp), blank_id, jnp.int32)

    valid = s < (2 * yl[:, None] + 1)
    vmask = jnp.where(valid, 0.0, NEG).astype(jnp.float32)

    ext_m2 = jnp.concatenate(
        [jnp.full((B_pad, 2), blank_id, jnp.int32), ext[:, :-2]], axis=1)
    allow_skip = (s >= 2) & (ext != blank_id) & (ext != ext_m2) & valid
    smask = jnp.where(allow_skip, 0.0, NEG).astype(jnp.float32)

    last = 2 * yl[:, None]
    fin = (s == last) | ((s == last - 1) & (yl[:, None] > 0))
    fmask = jnp.where(fin, 0.0, NEG).astype(jnp.float32)

    hl_b = jnp.broadcast_to(hl[:, None], (B_pad, Sp)).astype(jnp.int32)
    return ext, vmask, smask, fmask, hl_b


def online_ctc_forward(params, hs_pad, hlens, ys_pad, ys_lens, *, blank_id=0,
                       matmul_dtype=jnp.float32, group=8):
    # NOTE: set matmul_dtype=jnp.bfloat16 on v6e/v7x for full-rate MXU + half the HBM
    #       traffic for activations/weights (log-softmax / DP stay in f32).
    B, T, D = hs_pad.shape
    L = ys_pad.shape[1]
    Sp = max(128, _round_up(2 * L + 1, 128))
    B_pad = _round_up(B, group)

    ext, vmask, smask, fmask, hl_b = build_ctc_masks(
        ys_pad, ys_lens, hlens, B_pad=B_pad, Sp=Sp, blank_id=blank_id)

    # dropout_rate = 0.0 -> F.dropout is the identity
    ys_hat, em = ctc_log_probs_and_emissions(
        hs_pad, params["w"], params["b"], ext[:B], matmul_dtype=matmul_dtype)

    # pad batch to a multiple of the DP group size and go time-major: (T_pad, B_pad, Sp)
    T_pad = em.shape[1]
    em_p = jnp.pad(em, ((0, B_pad - B), (0, 0), (0, 0)))
    em_tb = jnp.transpose(em_p, (1, 0, 2))

    est = 2 * (T_pad * group * Sp * 4) + 8 * group * Sp * 4 + 2 * group * 128 * 4
    vmem_limit = int(min(max(2 * est, 32 * 2 ** 20), 100 * 2 ** 20))

    nll = pl.pallas_call(
        functools.partial(ctc_dp_kernel, t_end=T),
        out_shape=jax.ShapeDtypeStruct((B_pad, 128), jnp.float32),
        grid=(B_pad // group,),
        in_specs=[
            pl.BlockSpec((T_pad, group, Sp), lambda g: (0, g, 0)),
            pl.BlockSpec((group, Sp), lambda g: (g, 0)),
            pl.BlockSpec((group, Sp), lambda g: (g, 0)),
            pl.BlockSpec((group, Sp), lambda g: (g, 0)),
            pl.BlockSpec((group, Sp), lambda g: (g, 0)),
        ],
        out_specs=pl.BlockSpec((group, 128), lambda g: (g, 0)),
        compiler_params=pltpu.CompilerParams(
            dimension_semantics=("parallel",),          # independent groups -> both TCs on v7x
            vmem_limit_bytes=vmem_limit),
    )(em_tb, vmask, smask, fmask, hl_b)

    # reduction='mean' with zero_infinity=True: per-utterance nll / max(target_len, 1),
    # zero out infinite/invalid (incl. hlens == 0), mean over the true batch.
    nll_b = nll[:B, 0]
    den = jnp.maximum(ys_lens.astype(jnp.float32), 1.0)
    ok = (nll_b < 1e25) & (hlens.astype(jnp.int32) > 0)
    loss = jnp.mean(jnp.where(ok, nll_b / den, 0.0))
    return loss, ys_hat


# --------------------------------------------------------------------------------------
# Pure numpy reference (for correctness check)
# --------------------------------------------------------------------------------------
def reference_forward(w, b, hs, hlens, ys, ys_lens, blank=0):
    logits = hs.astype(np.float64) @ w.astype(np.float64) + b.astype(np.float64)
    m = logits.max(-1, keepdims=True)
    logp = logits - (m + np.log(np.exp(logits - m).sum(-1, keepdims=True)))
    B = hs.shape[0]
    losses = []
    for bb in range(B):
        Tb, Sb = int(hlens[bb]), int(ys_lens[bb])
        ext = [blank]
        for s in range(Sb):
            ext += [int(ys[bb, s]), blank]
        S = len(ext)
        alpha = np.full(S, -np.inf)
        alpha[0] = logp[bb, 0, ext[0]]
        if S > 1:
            alpha[1] = logp[bb, 0, ext[1]]
        for t in range(1, Tb):
            new = np.full(S, -np.inf)
            for s in range(S):
                c = [alpha[s]]
                if s >= 1:
                    c.append(alpha[s - 1])
                if s >= 2 and ext[s] != blank and ext[s] != ext[s - 2]:
                    c.append(alpha[s - 2])
                mm = max(c)
                if mm > -np.inf:
                    new[s] = mm + np.log(sum(np.exp(x - mm) for x in c)) + logp[bb, t, ext[s]]
            alpha = new
        tail = [alpha[-1]] + ([alpha[-2]] if S >= 2 else [])
        mm = max(tail)
        ll = mm + np.log(sum(np.exp(x - mm) for x in tail)) if mm > -np.inf else -np.inf
        l = -ll
        if not np.isfinite(l):
            l = 0.0
        losses.append(l / max(Sb, 1))
    return float(np.mean(losses)), logp


if __name__ == "__main__":
    B, T, D, V, L = 2, 16, 64, 32, 5
    key = jax.random.PRNGKey(0)
    k1, k2, k3, k4 = jax.random.split(key, 4)

    hs_pad = jax.random.normal(k1, (B, T, D), jnp.float32)
    bound = 1.0 / np.sqrt(D)
    weight = jax.random.uniform(k2, (D, V), jnp.float32, -bound, bound)   # ctc_lo.weight.T
    bias = jax.random.uniform(k3, (V,), jnp.float32, -bound, bound)       # ctc_lo.bias
    hlens = jnp.array([16, 12], jnp.int32)
    ys_pad = jax.random.randint(k4, (B, L), 1, V)                         # no blank labels
    ys_lens = jnp.array([5, 3], jnp.int32)

    params = {"w": weight, "b": bias}
    fwd = jax.jit(lambda p, hs, hl, ys, yl: online_ctc_forward(p, hs, hl, ys, yl))
    loss, ys_hat = fwd(params, hs_pad, hlens, ys_pad, ys_lens)
    loss = jax.block_until_ready(loss)
    ys_hat = jax.block_until_ready(ys_hat)

    ref_loss, ref_logp = reference_forward(np.asarray(weight), np.asarray(bias),
                                           np.asarray(hs_pad), np.asarray(hlens),
                                           np.asarray(ys_pad), np.asarray(ys_lens))
    assert np.allclose(np.asarray(ys_hat), ref_logp, atol=5e-3), "ys_hat mismatch"
    assert abs(float(loss) - ref_loss) < 5e-3, (float(loss), ref_loss)
    print("KERNEL_OK")
</pallas_src>

<mosaic_0001>
module attributes {stable_mosaic.version = 11 : i64} {
  func.func @linear_logsoftmax_emit_kernel(%arg0: i32, %arg1: i32, %arg2: memref<1x16x64xf32, #tpu.memory_space<vmem>>, %arg3: memref<64x32xf32, #tpu.memory_space<vmem>>, %arg4: memref<1x32xf32, #tpu.memory_space<vmem>>, %arg5: memref<1x1x128xi32, #tpu.memory_space<vmem>>, %arg6: memref<1x16x32xf32, #tpu.memory_space<vmem>>, %arg7: memref<1x16x128xf32, #tpu.memory_space<vmem>>) attributes {dimension_semantics = [#tpu.dimension_semantics<parallel>, #tpu.dimension_semantics<parallel>], iteration_bounds = array<i64: 2, 1>, scalar_prefetch = 0 : i64, scratch_operands = 0 : i64, tpu.core_type = #tpu.core_type<tc>, window_params = [{transform_indices = @transform_0, window_bounds = array<i64: 1, 16, 64>}, {pipeline_mode = #tpu.pipeline_mode<synchronous>, transform_indices = @transform_1, window_bounds = array<i64: 64, 32>}, {pipeline_mode = #tpu.pipeline_mode<synchronous>, transform_indices = @transform_2, window_bounds = array<i64: 1, 32>}, {transform_indices = @transform_3, window_bounds = array<i64: 1, 1, 128>}, {transform_indices = @transform_4, window_bounds = array<i64: 1, 16, 32>}, {transform_indices = @transform_5, window_bounds = array<i64: 1, 16, 128>}]} {
    %c0 = arith.constant 0 : index
    %c0_0 = arith.constant 0 : index
    %c0_1 = arith.constant 0 : index
    %0 = vector.load %arg2[%c0, %c0_0, %c0_1] : memref<1x16x64xf32, #tpu.memory_space<vmem>>, vector<1x16x64xf32>
    %1 = vector.shape_cast %0 : vector<1x16x64xf32> to vector<16x64xf32>
    %c0_2 = arith.constant 0 : index
    %c0_3 = arith.constant 0 : index
    %2 = vector.load %arg3[%c0_2, %c0_3] : memref<64x32xf32, #tpu.memory_space<vmem>>, vector<64x32xf32>
    %cst = arith.constant dense<0.000000e+00> : vector<16x32xf32>
    %3 = tpu.matmul %1, %2, %cst {dimension_numbers = #tpu.dot_dimension_numbers<[1], [0], [0], [1], [0, 0, 1, 1], [], []>} : vector<16x64xf32>, vector<64x32xf32>, vector<16x32xf32> -> vector<16x32xf32>
    %c0_4 = arith.constant 0 : index
    %c0_5 = arith.constant 0 : index
    %4 = vector.load %arg4[%c0_4, %c0_5] : memref<1x32xf32, #tpu.memory_space<vmem>>, vector<1x32xf32>
    %5 = vector.broadcast %4 : vector<1x32xf32> to vector<16x32xf32>
    %6 = arith.addf %3, %5 : vector<16x32xf32>
    %cst_6 = arith.constant dense<0xFF800000> : vector<16xf32>
    %7 = vector.multi_reduction <maximumf>, %6, %cst_6 [1] : vector<16x32xf32> to vector<16xf32>
    %8 = vector.shape_cast %7 : vector<16xf32> to vector<16x1xf32>
    %9 = vector.broadcast %8 : vector<16x1xf32> to vector<16x32xf32>
    %10 = arith.subf %6, %9 : vector<16x32xf32>
    %11 = math.exp %10 : vector<16x32xf32>
    %cst_7 = arith.constant dense<0.000000e+00> : vector<16xf32>
    %12 = vector.multi_reduction <add>, %11, %cst_7 [1] : vector<16x32xf32> to vector<16xf32>
    %13 = vector.shape_cast %12 : vector<16xf32> to vector<16x1xf32>
    %14 = math.log %13 : vector<16x1xf32>
    %15 = arith.addf %8, %14 : vector<16x1xf32>
    %16 = vector.broadcast %15 : vector<16x1xf32> to vector<16x32xf32>
    %17 = arith.subf %6, %16 : vector<16x32xf32>
    %c0_8 = arith.constant 0 : index
    %c0_9 = arith.constant 0 : index
    %c0_10 = arith.constant 0 : index
    %18 = vector.load %arg6[%c0_8, %c0_9, %c0_10] : memref<1x16x32xf32, #tpu.memory_space<vmem>>, vector<1x16x32xf32>
    %19 = vector.shape_cast %18 : vector<1x16x32xf32> to vector<16x32xf32>
    %20 = vector.shape_cast %17 : vector<16x32xf32> to vector<1x16x32xf32>
    tpu.vector_store %arg6[%c0_8, %c0_9, %c0_10], %20 {strides = array<i32>} : memref<1x16x32xf32, #tpu.memory_space<vmem>>, vector<1x16x32xf32>,
    %21 = tpu.iota {dimensions = array<i32: 0>} : vector<32x128xi32>
    %c0_11 = arith.constant 0 : index
    %c0_12 = arith.constant 0 : index
    %c0_13 = arith.constant 0 : index
    %22 = vector.load %arg5[%c0_11, %c0_12, %c0_13] : memref<1x1x128xi32, #tpu.memory_space<vmem>>, vector<1x1x128xi32>
    %23 = vector.shape_cast %22 : vector<1x1x128xi32> to vector<1x128xi32>
    %24 = vector.broadcast %23 : vector<1x128xi32> to vector<32x128xi32>
    %25 = arith.cmpi eq, %21, %24 : vector<32x128xi32>
    %26 = arith.extui %25 : vector<32x128xi1> to vector<32x128xi32>
    %27 = arith.sitofp %26 : vector<32x128xi32> to vector<32x128xf32>
    %cst_14 = arith.constant dense<0.000000e+00> : vector<16x128xf32>
    %28 = tpu.matmul %17, %27, %cst_14 {dimension_numbers = #tpu.dot_dimension_numbers<[1], [0], [0], [1], [0, 0, 1, 1], [], []>} : vector<16x32xf32>, vector<32x128xf32>, vector<16x128xf32> -> vector<16x128xf32>
    %c0_15 = arith.constant 0 : index
    %c0_16 = arith.constant 0 : index
    %c0_17 = arith.constant 0 : index
    %29 = vector.load %arg7[%c0_15, %c0_16, %c0_17] : memref<1x16x128xf32, #tpu.memory_space<vmem>>, vector<1x16x128xf32>
    %30 = vector.shape_cast %29 : vector<1x16x128xf32> to vector<16x128xf32>
    %31 = vector.shape_cast %28 : vector<16x128xf32> to vector<1x16x128xf32>
    tpu.vector_store %arg7[%c0_15, %c0_16, %c0_17], %31 {strides = array<i32>} : memref<1x16x128xf32, #tpu.memory_space<vmem>>, vector<1x16x128xf32>,
    return
  }
  func.func @transform_0(%arg0: i32, %arg1: i32) -> (i32, i32, i32) {
    %c0_i32 = arith.constant 0 : i32
    %c0_i32_0 = arith.constant 0 : i32
    return %arg0, %arg1, %c0_i32 : i32, i32, i32
  }
  func.func @transform_1(%arg0: i32, %arg1: i32) -> (i32, i32) {
    %c0_i32 = arith.constant 0 : i32
    %c0_i32_0 = arith.constant 0 : i32
    %c0_i32_1 = arith.constant 0 : i32
    return %c0_i32, %c0_i32_0 : i32, i32
  }
  func.func @transform_2(%arg0: i32, %arg1: i32) -> (i32, i32) {
    %c0_i32 = arith.constant 0 : i32
    %c0_i32_0 = arith.constant 0 : i32
    %c0_i32_1 = arith.constant 0 : i32
    return %c0_i32, %c0_i32_0 : i32, i32
  }
  func.func @transform_3(%arg0: i32, %arg1: i32) -> (i32, i32, i32) {
    %c0_i32 = arith.constant 0 : i32
    %c0_i32_0 = arith.constant 0 : i32
    %c0_i32_1 = arith.constant 0 : i32
    return %arg0, %c0_i32, %c0_i32_0 : i32, i32, i32
  }
  func.func @transform_4(%arg0: i32, %arg1: i32) -> (i32, i32, i32) {
    %c0_i32 = arith.constant 0 : i32
    %c0_i32_0 = arith.constant 0 : i32
    return %arg0, %arg1, %c0_i32 : i32, i32, i32
  }
  func.func @transform_5(%arg0: i32, %arg1: i32) -> (i32, i32, i32) {
    %c0_i32 = arith.constant 0 : i32
    %c0_i32_0 = arith.constant 0 : i32
    return %arg0, %arg1, %c0_i32 : i32, i32, i32
  }
}

module attributes {stable_mosaic.version = 11 : i64} {
  func.func @ctc_dp_kernel(%arg0: i32, %arg1: memref<16x8x128xf32, #tpu.memory_space<vmem>>, %arg2: memref<8x128xf32, #tpu.memory_space<vmem>>, %arg3: memref<8x128xf32, #tpu.memory_space<vmem>>, %arg4: memref<8x128xf32, #tpu.memory_space<vmem>>, %arg5: memref<8x128xi32, #tpu.memory_space<vmem>>, %arg6: memref<8x128xf32, #tpu.memory_space<vmem>>) attributes {dimension_semantics = [#tpu.dimension_semantics<parallel>], iteration_bounds = array<i64: 1>, scalar_prefetch = 0 : i64, scratch_operands = 0 : i64, tpu.core_type = #tpu.core_type<tc>, window_params = [{transform_indices = @transform_0, window_bounds = array<i64: 16, 8, 128>}, {transform_indices = @transform_1, window_bounds = array<i64: 8, 128>}, {transform_indices = @transform_2, window_bounds = array<i64: 8, 128>}, {transform_indices = @transform_3, window_bounds = array<i64: 8, 128>}, {transform_indices = @transform_4, window_bounds = array<i64: 8, 128>}, {transform_indices = @transform_5, window_bounds = array<i64: 8, 128>}]} {
    %0 = tpu.iota {dimensions = array<i32: 1>} : vector<8x128xi32>
    %c0 = arith.constant 0 : index
    %c0_0 = arith.constant 0 : index
    %1 = vector.load %arg2[%c0, %c0_0] : memref<8x128xf32, #tpu.memory_space<vmem>>, vector<8x128xf32>
    %c0_1 = arith.constant 0 : index
    %c0_2 = arith.constant 0 : index
    %2 = vector.load %arg3[%c0_1, %c0_2] : memref<8x128xf32, #tpu.memory_space<vmem>>, vector<8x128xf32>
    %c0_3 = arith.constant 0 : index
    %c0_4 = arith.constant 0 : index
    %3 = vector.load %arg5[%c0_3, %c0_4] : memref<8x128xi32, #tpu.memory_space<vmem>>, vector<8x128xi32>
    %c1_i32 = arith.constant 1 : i32
    %4 = vector.broadcast %c1_i32 : i32 to vector<8x128xi32>
    %5 = arith.cmpi sge, %0, %4 : vector<8x128xi32>
    %cst = arith.constant 0.000000e+00 : f32
    %cst_5 = arith.constant -1.000000e+30 : f32
    %6 = vector.broadcast %cst : f32 to vector<8x128xf32>
    %7 = vector.broadcast %cst_5 : f32 to vector<8x128xf32>
    %8 = arith.select %5, %6, %7 : vector<8x128xi1>, vector<8x128xf32>
    %c2_i32 = arith.constant 2 : i32
    %9 = vector.broadcast %c2_i32 : i32 to vector<8x128xi32>
    %10 = arith.cmpi slt, %0, %9 : vector<8x128xi32>
    %cst_6 = arith.constant 0.000000e+00 : f32
    %cst_7 = arith.constant -1.000000e+30 : f32
    %11 = vector.broadcast %cst_6 : f32 to vector<8x128xf32>
    %12 = vector.broadcast %cst_7 : f32 to vector<8x128xf32>
    %13 = arith.select %10, %11, %12 : vector<8x128xi1>, vector<8x128xf32>
    %c0_8 = arith.constant 0 : index
    %c0_9 = arith.constant 0 : index
    %c0_10 = arith.constant 0 : index
    %14 = vector.load %arg1[%c0_8, %c0_9, %c0_10] : memref<16x8x128xf32, #tpu.memory_space<vmem>>, vector<1x8x128xf32>
    %15 = vector.shape_cast %14 : vector<1x8x128xf32> to vector<8x128xf32>
    %16 = arith.addf %15, %1 : vector<8x128xf32>
    %17 = arith.addf %16, %13 : vector<8x128xf32>
    %cst_11 = arith.constant -1.000000e+30 : f32
    %18 = vector.broadcast %cst_11 : f32 to vector<8x128xf32>
    %19 = arith.maximumf %17, %18 : vector<8x128xf32>
    %c1_i32_12 = arith.constant 1 : i32
    %c15_i32 = arith.constant 15 : i32
    %20 = arith.addi %c1_i32_12, %c15_i32 : i32
    %c1_i32_13 = arith.constant 1 : i32
    %21 = scf.for %arg7 = %c1_i32_12 to %20 step %c1_i32_13 iter_args(%arg8 = %19) -> (vector<8x128xf32>)  : i32 {
      %c1_i32_22 = arith.constant 1 : i32
      %38 = tpu.dynamic_rotate %arg8 by %c1_i32_22 dim 1 : vector<8x128xf32>, i32 -> vector<8x128xf32>
      %39 = arith.addf %38, %8 : vector<8x128xf32>
      %c2_i32_23 = arith.constant 2 : i32
      %40 = tpu.dynamic_rotate %arg8 by %c2_i32_23 dim 1 : vector<8x128xf32>, i32 -> vector<8x128xf32>
      %41 = arith.addf %40, %2 : vector<8x128xf32>
      %42 = arith.maximumf %arg8, %39 : vector<8x128xf32>
      %43 = arith.maximumf %42, %41 : vector<8x128xf32>
      %44 = arith.subf %arg8, %43 : vector<8x128xf32>
      %45 = math.exp %44 : vector<8x128xf32>
      %46 = arith.subf %39, %43 : vector<8x128xf32>
      %47 = math.exp %46 : vector<8x128xf32>
      %48 = arith.addf %45, %47 : vector<8x128xf32>
      %49 = arith.subf %41, %43 : vector<8x128xf32>
      %50 = math.exp %49 : vector<8x128xf32>
      %51 = arith.addf %48, %50 : vector<8x128xf32>
      %52 = math.log %51 : vector<8x128xf32>
      %53 = arith.addf %43, %52 : vector<8x128xf32>
      %54 = arith.index_cast %arg7 : i32 to index
      %c0_24 = arith.constant 0 : index
      %c0_25 = arith.constant 0 : index
      %55 = vector.load %arg1[%54, %c0_24, %c0_25] : memref<16x8x128xf32, #tpu.memory_space<vmem>>, vector<1x8x128xf32>
      %56 = vector.shape_cast %55 : vector<1x8x128xf32> to vector<8x128xf32>
      %57 = arith.addf %53, %56 : vector<8x128xf32>
      %58 = arith.addf %57, %1 : vector<8x128xf32>
      %cst_26 = arith.constant -1.000000e+30 : f32
      %59 = vector.broadcast %cst_26 : f32 to vector<8x128xf32>
      %60 = arith.maximumf %58, %59 : vector<8x128xf32>
      %61 = vector.broadcast %arg7 : i32 to vector<8x128xi32>
      %62 = arith.cmpi slt, %61, %3 : vector<8x128xi32>
      %63 = arith.select %62, %60, %arg8 : vector<8x128xi1>, vector<8x128xf32>
      scf.yield %63 : vector<8x128xf32>
    }
    %c15_i32_14 = arith.constant 15 : i32
    %c0_15 = arith.constant 0 : index
    %c0_16 = arith.constant 0 : index
    %22 = vector.load %arg4[%c0_15, %c0_16] : memref<8x128xf32, #tpu.memory_space<vmem>>, vector<8x128xf32>
    %23 = arith.addf %21, %22 : vector<8x128xf32>
    %cst_17 = arith.constant dense<0xFF800000> : vector<8xf32>
    %24 = vector.multi_reduction <maximumf>, %23, %cst_17 [1] : vector<8x128xf32> to vector<8xf32>
    %25 = vector.shape_cast %24 : vector<8xf32> to vector<8x1xf32>
    %26 = vector.broadcast %25 : vector<8x1xf32> to vector<8x128xf32>
    %27 = arith.subf %23, %26 : vector<8x128xf32>
    %28 = math.exp %27 : vector<8x128xf32>
    %cst_18 = arith.constant dense<0.000000e+00> : vector<8xf32>
    %29 = vector.multi_reduction <add>, %28, %cst_18 [1] : vector<8x128xf32> to vector<8xf32>
    %30 = vector.shape_cast %29 : vector<8xf32> to vector<8x1xf32>
    %31 = math.log %30 : vector<8x1xf32>
    %32 = arith.addf %25, %31 : vector<8x1xf32>
    %cst_19 = arith.constant 0.000000e+00 : f32
    %33 = vector.broadcast %cst_19 : f32 to vector<8x1xf32>
    %34 = arith.subf %33, %32 : vector<8x1xf32>
    %35 = vector.shape_cast %34 : vector<8x1xf32> to vector<8x1xf32>
    %36 = vector.broadcast %35 : vector<8x1xf32> to vector<8x128xf32>
    %c0_20 = arith.constant 0 : index
    %c0_21 = arith.constant 0 : index
    %37 = vector.load %arg6[%c0_20, %c0_21] : memref<8x128xf32, #tpu.memory_space<vmem>>, vector<8x128xf32>
    tpu.vector_store %arg6[%c0_20, %c0_21], %36 {strides = array<i32>} : memref<8x128xf32, #tpu.memory_space<vmem>>, vector<8x128xf32>,
    return
  }
  func.func @transform_0(%arg0: i32) -> (i32, i32, i32) {
    %c0_i32 = arith.constant 0 : i32
    %c0_i32_0 = arith.constant 0 : i32
    %c0_i32_1 = arith.constant 0 : i32
    return %c0_i32, %arg0, %c0_i32_0 : i32, i32, i32
  }
  func.func @transform_1(%arg0: i32) -> (i32, i32) {
    %c0_i32 = arith.constant 0 : i32
    %c0_i32_0 = arith.constant 0 : i32
    return %arg0, %c0_i32 : i32, i32
  }
  func.func @transform_2(%arg0: i32) -> (i32, i32) {
    %c0_i32 = arith.constant 0 : i32
    %c0_i32_0 = arith.constant 0 : i32
    return %arg0, %c0_i32 : i32, i32
  }
  func.func @transform_3(%arg0: i32) -> (i32, i32) {
    %c0_i32 = arith.constant 0 : i32
    %c0_i32_0 = arith.constant 0 : i32
    return %arg0, %c0_i32 : i32, i32
  }
  func.func @transform_4(%arg0: i32) -> (i32, i32) {
    %c0_i32 = arith.constant 0 : i32
    %c0_i32_0 = arith.constant 0 : i32
    return %arg0, %c0_i32 : i32, i32
  }
  func.func @transform_5(%arg0: i32) -> (i32, i32) {
    %c0_i32 = arith.constant 0 : i32
    %c0_i32_0 = arith.constant 0 : i32
    return %arg0, %c0_i32 : i32, i32
  }
}

</mosaic_0001>

<bundles_post_ra>
// kernel: _lambda_.2
= control target key start
LH: loop header
LB: loop body
LE: loop exit
PB: predicated region body
PF: predicated region fallthrough
CT: control target
= control target key end

     0   :  { %11 = vsyncpa [#allocation3], 0  ;;  %s1125_s0 = inlined_call_operand.vmem [shape: f32[2,16,64], index: 0, kind: input, shape index: {}]   ;;  %s1126_s1 = inlined_call_operand.vmem [shape: f32[64,32], index: 1, kind: input, shape index: {}]   ;;  %s1127_s2 = inlined_call_operand.vmem [shape: f32[1,32], index: 2, kind: input, shape index: {}]   ;;  %s1128_s3 = inlined_call_operand.vmem [shape: s32[2,1,128], index: 3, kind: input, shape index: {}]   ;;  %s1129_s4 = inlined_call_operand.hbm [shape: f32[2,16,32], index: 4, kind: output, shape index: {0}]   ;;  %s1130_s5 = inlined_call_operand.vmem [shape: f32[2,16,128], index: 5, kind: output, shape index: {1}]  }
   0x1   :  { %13 = vsyncpa [#allocation3 + $0x1], 0  ;;  %s961_s18 = smov 0   ;;  %s963_s19 = smov 0  }
   0x2   :  { %s965_s20 = smov 0   ;;  %s967_s21 = smov 0  }
   0x3   :  { %s969_s22 = smov 0   ;;  %s971_s23 = smov 0  }
   0x4 LB: > { %s679_s24 = sadd.s32 4294967295, %s925_s23   ;;  %s680_s25 = sadd.s32 4294967294, %s925_s23   ;;  %s925_s23 = sphi %s971_s23, %s19_s23   ;;  %s921_s22 = sphi %s969_s22, %s1137_s22   ;;  %s917_s21 = sphi %s967_s21, %s1136_s21   ;;  %s913_s20 = sphi %s965_s20, %s1135_s20   ;;  %s909_s19 = sphi %s963_s19, %s1134_s19   ;;  %s905_s18 = sphi %s961_s18, %s1133_s18  }
   0x5   : > { %s31_s26 = sadd.s32 1, %s921_s22  ;;  %s136_s27 = sadd.s32 1, %s913_s20 }
   0x6   : > { %p33_p0 = scmp.ge.s32.totalorder %s31_s26, 2  ;;  %p146_p1 = scmp.ne.s32.totalorder %s913_s20, %s909_s19 }
   0x7   : > { %p147_p2 = scmp.eq.s32.totalorder %s679_s24, 1  ;;  %p152_p3 = scmp.ne.s32.totalorder %s909_s19, %s905_s18 }
   0x8   : > { %s1139_s26 = smov (%p33_p0, %s31_s26), 0  ;;  %p153_p5 = scmp.eq.s32.totalorder %s680_s25, 1 }
   0x9   : > { %p1001_p4 = por %p147_p2, %p146_p1  ;;  %s131_s29 = ssub.s32 %s921_s22, %s1139_s26 }
   0xa   : > { %p683_p6 = scmp.ge.s32.totalorder %s925_s23, 1  ;;  %p134_p7 = scmp.eq.s32.totalorder %s131_s29, 0 }
   0xb   : > { %p1008_p8 = por %p153_p5, %p152_p3  ;;  %p224_p9 = scmp.lt.s32.totalorder %s925_s23, 3 }
   0xc   : > { %s1014_s6 = scalar_select %p134_p7, %s913_s20, %s136_s27  }
   0xd   : > { %p225_p10 = pnand %p683_p6, %p224_p9 }
   0xe   : > { %v294_v0 = vld [vmem:[%s1126_s1] sm:$0xff] (!%p225_p10)  ;;  %v295_v1 = vld [vmem:[%s1126_s1 + $0x8] sm:$0xff] (!%p225_p10)  ;;  %v296_v2 = vld [vmem:[%s1126_s1 + $0x10] sm:$0xff] (!%p225_p10)  ;;  %p269_p11 = scmp.lt.s32.totalorder (!%p225_p10), %s917_s21, 1  ;;  %vm309_vm0 = vcmask (!%p225_p10), 523264   ;;  %vm391_vm1 = vcmask (!%p225_p10), 261120   ;;  %v420_v31 = vlaneseq (!%p225_p10) }
   0xf   : > { %228 = sbr.rel (%p225_p10) target bundleno = 784 (0x310), region = 36  ;;  %v757_v3 = vpack.c.bf16 (!%p225_p10), %v295_v1, %v294_v0  ;;  %v297_v4 = vld [vmem:[%s1126_s1 + $0x18] sm:$0xff] (!%p225_p10)  ;;  %v298_v6 = vld [vmem:[%s1126_s1 + $0x20] sm:$0xff] (!%p225_p10)  ;;  %v299_v7 = vld [vmem:[%s1126_s1 + $0x28] sm:$0xff] (!%p225_p10)  ;;  %v927_v35 = vmov (!%p225_p10), 1.0|1.0  }
  0x10   : > { %v761_v5 = vpack.c.bf16 (!%p225_p10), %v297_v4, %v296_v2  ;;  %v765_v8 = vpack.c.bf16 (!%p225_p10), %v299_v7, %v298_v6  ;;  %v300_v9 = vld [vmem:[%s1126_s1 + $0x30] sm:$0xff] (!%p225_p10)  ;;  %v301_v10 = vld [vmem:[%s1126_s1 + $0x38] sm:$0xff] (!%p225_p10)  ;;  %v689_v14 = vld [vmem:[%s1127_s2] ss:$0 sm:$0xff] (!%p225_p10)  ;;  %v421_v32 = vshrl.u32 (!%p225_p10), %v420_v31, 7  ;;  %s254_s24 = sand.u32 (!%p225_p10), 1, %s909_s19  }
  0x11   : > { %758 = vmatprep.subr.bf16.mxu0 (!%p225_p10), %v757_v3  ;;  %v769_v12 = vpack.c.bf16 (!%p225_p10), %v301_v10, %v300_v9  ;;  %s684_s29 = sshll.u32 (!%p225_p10), %s254_s24, 4  ;;  %s710_s9 = sshll.u32 (!%p225_p10), %s917_s21, 8 }
  0x12   : > { %760 = vmatpush3.bf16.msra.mxu0 (!%p225_p10), %v757_v3  ;;  %v422_v33 = vadd.s32 (!%p225_p10), 8, %v421_v32  ;;  %v423_v36 = vadd.s32 (!%p225_p10), 16, %v421_v32  ;;  %v424_v37 = vadd.s32 (!%p225_p10), 24, %v421_v32  ;;  %s256_s7 = scalar_lea.vmem (!%p225_p10), [#allocation2], %s684_s29  ;;  %s1072_s12 = scalar_lea.hbm (!%p225_p10), %s1129_s4, %s710_s9 }
  0x13   : > { %762 = vmatprep.subr.bf16.mxu0 (!%p225_p10), %v761_v5  ;;  %s1074_s13 = scalar_lea.sflag (!%p225_p10), [#allocation3], %s254_s24  ;;  %s928_s15 = smov (!%p225_p10), [#allocation2]  }
  0x14   : > { %s851_s16 = sshll.u32 (!%p225_p10), %s928_s15, 4  ;;  %s852_s16 = int_to_ptr.vmem [resolvable:$false] %s851_s16 }
  0x16   : > { %s1036_s25 = scalar_select %p269_p11, %s917_s21, 1  ;;  %764 = vmatpush3.bf16.msra.mxu0 %v761_v5 }
  0x17   : > { %766 = vmatprep.subr.bf16.mxu0 %v765_v8 }
  0x18   : > { %s708_s27 = sshll.u32 %s1036_s25, 4  ;;  %s280_s17 = scalar_lea.vmem %s1128_s3, %s1036_s25 }
  0x19   : > { %s276_s8 = scalar_lea.vmem %s1125_s0, %s708_s27  ;;  %v692_v34 = vld [vmem:[%s280_s17] ss:$0 sm:$0xff]  ;;  %s853_s17 = scalar_lea.vmem %s852_s16, 512 }
  0x1a   : > { %v292_v11 = vld [vmem:[%s276_s8] sm:$0xff]  ;;  %768 = vmatpush3.bf16.msra.mxu0 %v765_v8  ;;  %v293_v13 = vld [vmem:[%s276_s8 + $0x8] sm:$0xff]  ;;  %vm430_vm2 = vcmp.eq.s32.totalorder %v421_v32, %v692_v34  ;;  %vm431_vm3 = vcmp.eq.s32.totalorder %v422_v33, %v692_v34  ;;  %vm432_vm5 = vcmp.eq.s32.totalorder %v423_v36, %v692_v34  ;;  %vm433_vm6 = vcmp.eq.s32.totalorder %v424_v37, %v692_v34  ;;  %s550_s8 = sshll.u32 %s256_s7, 4  ;;  %s1066_s8 = int_to_ptr.vmem [resolvable:$true] %s550_s8 }
  0x1b   : > { %743 = vmatprep.mubr.msk.f32.mxu0 %vm309_vm0, %v292_v11  ;;  %770 = vmatprep.subr.bf16.mxu0 %v769_v12  ;;  %vm773_vm4 = vmpackc.low %vm431_vm3, %vm430_vm2  ;;  %s847_s14 = scalar_lea.vmem %s1066_s8, 256  ;;  %p854_p1 = scmp.lt.s32.totalorder %s1066_s8, %s852_s16 }
  0x1c   : > { %774 = vmatprep.subr.msk.bf16.mxu1 %vm773_vm4, %v927_v35  ;;  %vm777_vm7 = vmpackc.low %vm433_vm6, %vm432_vm5  ;;  %p848_p12 = scmp.ne.s32.totalorder %s1066_s8, %s847_s14  ;;  %p855_p2 = scmp.lt.s32.totalorder %s853_s17, %s847_s14 }
  0x1d   : > { %776 = vmatpush3.bf16.msk.msra.mxu1 %vm773_vm4, %v927_v35 }
  0x1e   : > { %772 = vmatpush3.bf16.msra.mxu0 %v769_v12  ;;  %778 = vmatprep.subr.msk.bf16.mxu1 %vm777_vm7, %v927_v35  ;;  %p849_p13 = pnand %p848_p12, %p1001_p4  ;;  %p856_p3 = por %p855_p2, %p854_p1 }
  0x20   : > { %p850_p0 = pneg %p849_p13 }
  0x21   : > { %744 = vmatmul.mubr.msk.f32.vlgmr.msra.gmra.mrb[0].mxu0 %vm309_vm0, %v293_v13  ;;  %780 = vmatpush3.bf16.msk.msra.mxu1 %vm777_vm7, %v927_v35 }
  0x22   : > { %p857_p5 = pnand %p856_p3, %p850_p0 }
  0xf4   : > { %v745_v15 = vpop.f32.mrb[0].mxu0 }
  0xf5   : > { %v382_v16 = vpop.f32.mrb[1].mxu0  ;;  %v388_v18 = vadd.f32 %v745_v15, %v689_v14 }
  0xf6   : > { %v383_v17 = vadd.f32 %v689_v14, %v382_v16 }
  0xf7   : > { %v395_v20 = vsel %vm391_vm1, %v388_v18, -inf }
  0xf8   : > { %v392_v19 = vsel %vm391_vm1, %v383_v17, -inf }
  0xf9   : > { %393 = vmax.xlane.f32.xlu0 %v392_v19 }
  0xfd   : > { %396 = vmax.xlane.f32.xlu0 %v395_v20 }
 0x186   : > { %v394_v21 = vpop.xlane.xlu0 %393 }
 0x187   : > { %v398_v22 = vsub.f32 %v383_v17, %v394_v21 }
 0x189   : > { %v400_v23 = vmul.f32 1.442695, %v398_v22 }
 0x18a   : > { %v397_v24 = vpop.xlane.xlu0 %396 }
 0x18b   : > { %839 = vpow2.f32 %v400_v23  ;;  %v399_v25 = vsub.f32 %v388_v18, %v397_v24 }
 0x18d   : > { %v402_v26 = vmul.f32 1.442695, %v399_v25 }
 0x18f   : > { %841 = vpow2.f32 %v402_v26 }
 0x195   : > { %v840_v27 = vpop.eup %839 }
 0x196   : > { %v404_v28 = vsel %vm391_vm1, %v840_v27, 0.0 }
 0x197   : > { %405 = vadd.xlane.f32.xlu1 %v404_v28 }
 0x199   : > { %v842_v29 = vpop.eup %841 }
 0x19a   : > { %v407_v30 = vsel %vm391_vm1, %v842_v29, 0.0 }
 0x19b   : > { %408 = vadd.xlane.f32.xlu1 %v407_v30 }
 0x224   : > { %v406_v38 = vpop.xlane.xlu1 %405 }
 0x225   : > { %843 = vlog2.f32 %v406_v38 }
 0x228   : > { %v409_v39 = vpop.xlane.xlu1 %408 }
 0x229   : > { %845 = vlog2.f32 %v409_v39 }
 0x22f   : > { %v844_v40 = vpop.eup %843 }
 0x230   : > { %v411_v41 = vmul.f32 0.6931472, %v844_v40 }
 0x232   : > { %v414_v42 = vadd.f32 %v411_v41, %v394_v21 }
 0x233   : > { %v846_v43 = vpop.eup %845 }
 0x234   : > { %v413_v44 = vmul.f32 0.6931472, %v846_v43  ;;  %v416_v45 = vsub.f32 %v383_v17, %v414_v42 }
 0x236   : > { %v415_v46 = vadd.f32 %v413_v44, %v397_v24  ;;  %418 = vst.msk [vmem:[%s256_s7] sm:$0xff] %vm391_vm1, %v416_v45  ;;  %754 = vmatprep.mubr.msk.f32.mxu1 %vm391_vm1, %v416_v45 }
 0x238   : > { %v417_v47 = vsub.f32 %v388_v18, %v415_v46 }
 0x23a   : > { %419 = vst.msk [vmem:[%s256_s7 + $0x8] sm:$0xff] %vm391_vm1, %v417_v47  ;;  %755 = vmatmul.mubr.msk.f32.vlgmr.msra.gmra.mrb[0].mxu1 %vm391_vm1, %v417_v47 }
 0x23b   : > { %860 = shalt.err (!%p857_p5)
}
 0x23c   : > { %s861_s21 = scalar_lea.hbm %s1072_s12, 256  ;;  %s865_s7 = scalar_lea.hbm %s1129_s4, 512 }
 0x23d   : > { %p862_p6 = scmp.ne.s32.totalorder %s1072_s12, %s861_s21  ;;  %p866_p10 = scmp.lt.u32.totalorder %s1072_s12, %s1129_s4 }
 0x23e   : > { %p867_p11 = scmp.lt.u32.totalorder %s865_s7, %s861_s21  ;;  %p869_p13 = scmp.lt.u32.totalorder %s861_s21, %s1072_s12 }
 0x23f   : > { %p863_p7 = pnand %p862_p6, %p1001_p4 }
 0x240   : > { %p868_p12 = por %p867_p11, %p866_p10 }
 0x241   : > { %p864_p9 = pneg %p863_p7 }
 0x242   : > { %p870_p0 = por %p869_p13, %p868_p12 }
 0x244   : > { %p871_p1 = pnand %p870_p0, %p864_p9 }
 0x246   : > { %874 = shalt.err (!%p871_p1)
}
 0x247   : > { %s929_s11 = smov 128   ;;  %s930_s14 = smov 8  }
 0x248   : > { %781 = dma.vmem_to_hbm [thread:$0]  (%p1001_p4), %s1066_s8, 256, %s1072_s12, %s1074_s13, %s929_s11, %s929_s11, %s930_s14  }
 0x249   : > { %s290_s17 = scalar_lea.vmem %s1130_s5, %s708_s27 }
 0x30d   : > { %v756_v48 = vpop.f32.mrb[0].mxu1 }
 0x30e   : > { %524 = vst [vmem:[%s290_s17 + $0x8] sm:$0xff] %v756_v48  ;;  %v514_v49 = vpop.f32.mrb[1].mxu1 }
 0x30f   : > { %523 = vst [vmem:[%s290_s17] sm:$0xff] %v514_v49 }
 0x310 PF: > { %p787_p2 = scmp.ge.s32.totalorder %s925_s23, 2  ;;  %s569_s21 = sand.u32 1, %s905_s18  }
 0x311   : > { %s570_s24 = scalar_lea.sflag [#allocation3], %s569_s21 }
 0x312   : > { %p784_p3 = pnand %p787_p2, %p1008_p8 }
 0x314   : > { %900 = dma.done.wait (!%p784_p3), %s570_s24, 256  }
 0x315   : > { %902 = vsyncadd (!%p784_p3), %s570_s24, 4294967040  ;;  %s19_s23 = sadd.s32 1, %s925_s23   ;;  %s1133_s18 = smov %s909_s19 }
 0x316   : > { %p16_p4 = scmp.ge.s32.totalorder %s19_s23, 4   ;;  %s1134_s19 = smov %s913_s20 }
 0x317   : > { %s1135_s20 = smov %s1014_s6  ;;  %s1136_s21 = smov %s921_s22 }
 0x318   : > { %s1137_s22 = smov %s1139_s26  ;;  %18 = sbr.rel (!%p16_p4) target bundleno = 4 (0x4), region = 86 }
 0x31f   :  { %587 = vsyncpa [#allocation3], 1 }
 0x320   :  { %589 = vsyncpa [#allocation3 + $0x1], 1 }

// kernel: _lambda_.3
= control target key start
LH: loop header
LB: loop body
LE: loop exit
PB: predicated region body
PF: predicated region fallthrough
CT: control target
= control target key end

     0   :  { %v20_v0 = vlaneseq  ;;  %v147_v7 = vmov -1e+30   ;;  %s211_s0 = inlined_call_operand.vmem [shape: f32[16,8,128], index: 0, kind: input, shape index: {}]   ;;  %s212_s1 = inlined_call_operand.vmem [shape: f32[8,128], index: 1, kind: input, shape index: {}]   ;;  %s213_s2 = inlined_call_operand.vmem [shape: f32[8,128], index: 2, kind: input, shape index: {}]   ;;  %s214_s3 = inlined_call_operand.vmem [shape: f32[8,128], index: 3, kind: input, shape index: {}]   ;;  %s215_s4 = inlined_call_operand.vmem [shape: s32[8,128], index: 4, kind: input, shape index: {}]   ;;  %s216_s5 = inlined_call_operand.vmem [shape: f32[8,128], index: 5, kind: output, shape index: {}]  }
   0x1   :  { %v22_v1 = vld [vmem:[%s212_s1] sm:$0xff]  ;;  %s192_s1 = smov 1  }
   0x2   :  { %v23_v2 = vld [vmem:[%s213_s2] sm:$0xff]  ;;  %v21_v4 = vand.u32 127, %v20_v0 }
   0x3   :  { %v24_v3 = vld [vmem:[%s215_s4] sm:$0xff] }
   0x4   :  { %v29_v5 = vld [vmem:[%s211_s0] sm:$0xff]  ;;  %vm25_vm0 = vcmp.ge.s32.totalorder %v21_v4, 1  ;;  %vm27_vm1 = vcmp.lt.s32.totalorder %v21_v4, 2 }
   0x5   :  { %v30_v6 = vadd.f32 %v29_v5, %v22_v1  ;;  %v26_v8 = vsel %vm25_vm0, 0.0, %v147_v7  ;;  %v28_v9 = vsel %vm27_vm1, 0.0, %v147_v7 }
   0x7   :  { %v31_v10 = vadd.f32 %v30_v6, %v28_v9 }
   0x9   :  { %v32_v11 = vmax.f32 %v31_v10, -1e+30  }
   0xb   :  { %v139_v12 = vmov %v32_v11  }
   0xc LB: > { %s148_s2 = smov 1   ;;  %s149_s4 = smov 2   ;;  %v68_v34 = vstv %s145_s1  ;;  %s145_s1 = sphi %s192_s1, %s38_s1   ;;  %v141_v12 = vphi %v139_v12, %v140_v12  }
   0xd   : > { %40 = vrot.lane.b32.xlu0 %v141_v12, %s148_s2  ;;  %s99_s26 = sshll.u32 %s145_s1, 3  ;;  %vm69_vm2 = vcmp.lt.s32.totalorder %v68_v34, %v24_v3  ;;  %s38_s1 = sadd.s32 1, %s145_s1  }
   0xe   : > { %s63_s29 = scalar_lea.vmem %s211_s0, %s99_s26  ;;  %p35_p0 = scmp.ge.s32.totalorder %s38_s1, 16  }
   0xf   : > { %v64_v32 = vld [vmem:[%s63_s29] sm:$0xff] }
  0x10   :  { %v71_v39 = vld [vmem:[%s214_s3] sm:$0xff] (%p35_p0) }
  0x11   : > { %43 = vrot.lane.b32.xlu0 %v141_v12, %s149_s4 }
  0x7f   : > { %v41_v13 = vpop.permute.xlu0 %40 }
  0x80   : > { %v42_v14 = vadd.f32 %v41_v13, %v26_v8 }
  0x82   : > { %v46_v16 = vmax.f32 %v141_v12, %v42_v14 }
  0x83   : > { %v44_v15 = vpop.permute.xlu0 %43 }
  0x84   : > { %v45_v17 = vadd.f32 %v44_v15, %v23_v2 }
  0x86   : > { %v47_v18 = vmax.f32 %v46_v16, %v45_v17 }
  0x88   : > { %v48_v19 = vsub.f32 %v141_v12, %v47_v18  ;;  %v51_v20 = vsub.f32 %v42_v14, %v47_v18  ;;  %v55_v21 = vsub.f32 %v45_v17, %v47_v18 }
  0x8a   : > { %v49_v22 = vmul.f32 1.442695, %v48_v19  ;;  %v52_v23 = vmul.f32 1.442695, %v51_v20  ;;  %v56_v24 = vmul.f32 1.442695, %v55_v21 }
  0x8c   : > { %119 = vpow2.f32 %v49_v22 }
  0x8d   : > { %121 = vpow2.f32 %v52_v23 }
  0x8e   : > { %123 = vpow2.f32 %v56_v24 }
  0x96   : > { %v120_v25 = vpop.eup %119 }
  0x97   : > { %v122_v26 = vpop.eup %121 }
  0x98   : > { %v54_v27 = vadd.f32 %v122_v26, %v120_v25  ;;  %v124_v28 = vpop.eup %123 }
  0x9a   : > { %v58_v29 = vadd.f32 %v124_v28, %v54_v27 }
  0x9c   : > { %125 = vlog2.f32 %v58_v29 }
  0xa6   : > { %v126_v30 = vpop.eup %125 }
  0xa7   : > { %v60_v31 = vmul.f32 0.6931472, %v126_v30 }
  0xa9   : > { %v61_v33 = vadd.f32 %v60_v31, %v47_v18 }
  0xab   : > { %v65_v35 = vadd.f32 %v64_v32, %v61_v33 }
  0xac   :  { %37 = sbr.rel (!%p35_p0) target bundleno = 12 (0xc), region = 48 }
  0xad   : > { %v66_v36 = vadd.f32 %v65_v35, %v22_v1 }
  0xaf   : > { %v67_v37 = vmax.f32 %v66_v36, -1e+30 }
  0xb1   : > { %v70_v38 = vsel %vm69_vm2, %v67_v37, %v141_v12  }
  0xb2   : > { %v140_v12 = vmov %v70_v38   ;;  %v72_v40 = vadd.f32 (%p35_p0), %v71_v39, %v70_v38 }
  0xb4   :  { %73 = vmax.xlane.f32.xlu0 %v72_v40 }
 0x141   :  { %v74_v41 = vpop.xlane.xlu0 %73 }
 0x142   :  { %v75_v42 = vsub.f32 %v72_v40, %v74_v41 }
 0x144   :  { %v76_v43 = vmul.f32 1.442695, %v75_v42 }
 0x146   :  { %127 = vpow2.f32 %v76_v43 }
 0x150   :  { %v128_v44 = vpop.eup %127 }
 0x151   :  { %78 = vadd.xlane.f32.xlu0 %v128_v44 }
 0x1de   :  { %v79_v45 = vpop.xlane.xlu0 %78 }
 0x1df   :  { %129 = vlog2.f32 %v79_v45 }
 0x1e9   :  { %v130_v46 = vpop.eup %129 }
 0x1ea   :  { %v81_v47 = vmul.f32 0.6931472, %v130_v46 }
 0x1ec   :  { %v82_v48 = vadd.f32 %v81_v47, %v74_v41 }
 0x1ee   :  { %v83_v49 = vsub.f32 0.0, %v82_v48 }
 0x1f0   :  { %84 = vst [vmem:[%s216_s5] sm:$0xff] %v83_v49 }

</bundles_post_ra>
